<compile_context>
chip_gen: v6e
topology: v6e:2x2x1
jax: 0.10.0
libtpu: 0.0.40
codegen_flags: <defaults>
</compile_context>

<pallas_src>
import functools

import jax
import jax.numpy as jnp
from jax.experimental import pallas as pl
from jax.experimental.pallas import tpu as pltpu

BN_EPS = 1e-5


# ------------------------- Stage 1: BN batch statistics -------------------------

def bn_stats_kernel(xf_ref, scale_ref, shift_ref, sum_ref, sumsq_ref, *,
                    total_rows, ragged):
    """Tiled row-block reduction over (B*N, D); emits scale=rsqrt(var+eps), shift=-mean*scale."""
    r = pl.program_id(0)
    last = pl.num_programs(0) - 1

    @pl.when(r == 0)
    def _():
        sum_ref[...] = jnp.zeros_like(sum_ref)
        sumsq_ref[...] = jnp.zeros_like(sumsq_ref)

    def accumulate(x):
        sum_ref[...] += jnp.sum(x, axis=0, keepdims=True)
        sumsq_ref[...] += jnp.sum(x * x, axis=0, keepdims=True)

    if ragged:
        # Only the final block is ragged; gate the mask so full blocks pay nothing.
        @pl.when(r != last)
        def _():
            accumulate(xf_ref[...])

        @pl.when(r == last)
        def _():
            rb = xf_ref.shape[0]
            row = r * rb + jax.lax.broadcasted_iota(jnp.int32, (rb, 1), 0)
            accumulate(jnp.where(row < total_rows, xf_ref[...], 0.0))
    else:
        accumulate(xf_ref[...])

    @pl.when(r == last)
    def _():
        inv_n = 1.0 / total_rows
        mean = sum_ref[...] * inv_n
        # E[x^2]-E[x]^2 in f32 (BN training-mode biased var); matches the reference.
        var = sumsq_ref[...] * inv_n - mean * mean
        inv_std = jax.lax.rsqrt(var + BN_EPS)
        scale_ref[...] = inv_std
        shift_ref[...] = -mean * inv_std


def _bn_stats(xf):
    total, d = xf.shape
    target_bytes = 4 << 20                          # ~4 MiB f32 per block (8192 rows @ D=128)
    rb = min(total, max(8, ((target_bytes // (d * 4)) // 8) * 8))
    if rb >= total:
        rb = total
    grid_r = pl.cdiv(total, rb)
    ragged = (rb * grid_r != total)

    return pl.pallas_call(
        functools.partial(bn_stats_kernel, total_rows=total, ragged=ragged),
        out_shape=(jax.ShapeDtypeStruct((1, d), jnp.float32),
                   jax.ShapeDtypeStruct((1, d), jnp.float32)),
        grid_spec=pltpu.PrefetchScalarGridSpec(
            num_scalar_prefetch=0,
            grid=(grid_r,),
            in_specs=[pl.BlockSpec((rb, d), lambda r: (r, 0))],
            out_specs=[pl.BlockSpec((1, d), lambda r: (0, 0)),
                       pl.BlockSpec((1, d), lambda r: (0, 0))],
            scratch_shapes=[pltpu.VMEM((1, d), jnp.float32),
                            pltpu.VMEM((1, d), jnp.float32)]),
        compiler_params=pltpu.CompilerParams(dimension_semantics=("arbitrary",)),
    )(xf)


# ------------------------- BN folding -------------------------

def fold_bn_into_gc1(w1, b1, scale, shift):
    """Fold BatchNorm1d(affine=False) into GraphConv-1's (2D, F) weight and bias.

    Valid because MeanAggregator's A is row-stochastic (rows sum to 1), so
    A @ (x*scale + shift) == (A@x)*scale + shift.
    """
    d = scale.shape[-1]
    s = scale.reshape(d, 1)
    w1_folded = jnp.concatenate([w1[:d] * s, w1[d:] * s], axis=0)
    b1_folded = b1.reshape(1, -1) + shift.reshape(1, d) @ (w1[:d] + w1[d:])
    return w1_folded, b1_folded


# ------------------------- Stage 2: fused 2x GraphConv -------------------------

def gcn_kernel(x_ref, a_ref, w1_ref, b1_ref, w2_ref, b2_ref, out_ref):
    """One grid step = `bb` graphs: 2x GraphConv(MeanAggregator); BN pre-folded into W1/b1."""
    bb, n, d = x_ref.shape
    f = w1_ref.shape[1]
    a = a_ref[...]                                               # (bb, N, N) bf16

    def graph_conv(feat2d_bf16, w_ref, b_ref):
        # feat2d_bf16: (bb*N, d_in) bf16, lane-dense.
        d_in = feat2d_bf16.shape[-1]
        # MeanAggregator: batched A @ feat (A already row-normalized and bf16), f32 acc.
        agg = jnp.einsum('bij,bjd->bid', a, feat2d_bf16.reshape(bb, n, d_in),
                         preferred_element_type=jnp.float32)     # (bb, N, d_in) f32
        # Original GraphConv concat form: one K = 2*d_in matmul fills the 256-deep MXU on
        # v6e/v7x and avoids a second weight-stationary pass + extra f32 accumulator add.
        cat = jnp.concatenate(
            [feat2d_bf16, agg.astype(jnp.bfloat16).reshape(bb * n, d_in)], axis=-1)
        h = jnp.dot(cat, w_ref[...], preferred_element_type=jnp.float32) + b_ref[...]
        return jnp.maximum(h, 0.0)                               # (bb*N, d_out) f32

    x2d = x_ref[...].reshape(bb * n, d).astype(jnp.bfloat16)      # BN folded into w1/b1
    h1 = graph_conv(x2d, w1_ref, b1_ref)                          # stays 2-D across layers
    h2 = graph_conv(h1.astype(jnp.bfloat16), w2_ref, b2_ref)
    out_ref[...] = h2.reshape(bb, n, f).astype(out_ref.dtype)


# ------------------------- block-size / VMEM heuristics -------------------------

def _largest_divisor_leq(n, cap):
    cap = max(1, min(n, cap))
    for d in range(cap, 0, -1):
        if n % d == 0:
            return d
    return 1


def _stage2_vmem_bytes(bb, n, d, f):
    rows = bb * n
    io = (rows * d * 4                                # x block (f32)
          + bb * n * n * 2                            # A block (bf16)
          + rows * f * 4                              # out block
          + (2 * d * f + 2 * f * f) * 2 + 2 * f * 4)  # weights (bf16) + biases (f32)
    inter = rows * (d * 4 + 2 * d * 2 + 2 * f * 4 + 2 * f * 2 + f * 4)  # agg/cat/h per layer
    return 2 * io + inter                             # BlockSpec double-buffers I/O blocks


def _pick_batch_block(B, N, D, F, vmem_budget):
    # Target ~512 matmul rows per step (amortize weight loads / per-step overhead on v6e),
    # but keep >= 2 grid steps so the "parallel" batch axis shards across v7x's 2 TCs,
    # pick a divisor of B (no OOB-padded last block), and respect the VMEM budget.
    bb = max(1, min(B, max(1, 512 // max(N, 1))))
    if B >= 2:
        bb = min(bb, -(-B // 2))
    bb = _largest_divisor_leq(B, bb)
    while bb > 1 and _stage2_vmem_bytes(bb, N, D, F) > vmem_budget:
        bb = _largest_divisor_leq(B, bb - 1)
    return bb


# ------------------------- wrapper -------------------------

def gcn_forward(x, A, params, *, batch_block=None, out_dtype=jnp.float32,
                vmem_limit_bytes=None):
    B, N, D = x.shape
    F = params["w1"].shape[1]

    # ---- Stage 1: BN batch statistics (HBM-bandwidth-bound tiled reduction) ----
    xf = x.reshape(B * N, D).astype(jnp.float32)
    scale, shift = _bn_stats(xf)

    # ---- Fold BN into GraphConv-1 (drops per-row FMA + two const DMAs in the kernel) ----
    w1_folded, b1_folded = fold_bn_into_gc1(
        params["w1"].astype(jnp.float32), params["b1"].astype(jnp.float32), scale, shift)
    w1_b = w1_folded.astype(jnp.bfloat16)
    w2_b = params["w2"].astype(jnp.bfloat16)
    b1_f = b1_folded.astype(jnp.float32)
    b2_f = params["b2"].reshape(1, F).astype(jnp.float32)

    # A cast to bf16 (halves its HBM/VMEM footprint); under jit this fuses with A's
    # producer. If A arrives f32 from a cold buffer and VMEM is plentiful (v5e/v6e),
    # casting in-kernel instead would avoid the extra HBM pass.
    a_b = A.astype(jnp.bfloat16)

    # ---- Stage 2: fused 2x GraphConv, bb graphs per grid step ----
    bb = _pick_batch_block(B, N, D, F, vmem_budget=24 << 20) if batch_block is None \
        else batch_block
    grid_b = pl.cdiv(B, bb)

    if vmem_limit_bytes is None:
        # Explicit limit: v5e's default scoped VMEM (16 MiB) is hit much earlier than v6e's.
        vmem_limit_bytes = int(min(128 << 20,
                                   max(32 << 20, 2 * _stage2_vmem_bytes(bb, N, D, F))))

    const = lambda shape: pl.BlockSpec(shape, lambda b: (0, 0))
    out = pl.pallas_call(
        gcn_kernel,
        out_shape=jax.ShapeDtypeStruct((B, N, F), out_dtype),
        grid_spec=pltpu.PrefetchScalarGridSpec(
            num_scalar_prefetch=0,
            grid=(grid_b,),
            in_specs=[
                pl.BlockSpec((bb, N, D), lambda b: (b, 0, 0)),   # x (f32)
                pl.BlockSpec((bb, N, N), lambda b: (b, 0, 0)),   # A (bf16)
                const((2 * D, F)),                               # W1 (BN-folded, bf16)
                const((1, F)),                                   # b1 (folded, f32)
                const((2 * F, F)),                               # W2 (bf16)
                const((1, F)),                                   # b2 (f32)
            ],
            out_specs=pl.BlockSpec((bb, N, F), lambda b: (b, 0, 0)),
        ),
        compiler_params=pltpu.CompilerParams(
            dimension_semantics=("parallel",),                   # >=2 steps -> v7x megacore
            vmem_limit_bytes=vmem_limit_bytes),
    )(x, a_b, w1_b, b1_f, w2_b, b2_f)
    return out


# ------------------------- param init + reference -------------------------

def xavier_uniform(key, shape):
    fan_in, fan_out = shape
    bound = (6.0 / (fan_in + fan_out)) ** 0.5
    return jax.random.uniform(key, shape, jnp.float32, -bound, bound)


def init_params(key, d_in, d_out):
    k1, k2 = jax.random.split(key)
    return {
        "w1": xavier_uniform(k1, (2 * d_in, d_out)),   # GraphConv-1 weight (PyTorch layout)
        "b1": jnp.zeros((d_out,), jnp.float32),
        "w2": xavier_uniform(k2, (2 * d_out, d_out)),  # GraphConv-2 weight
        "b2": jnp.zeros((d_out,), jnp.float32),
    }


def gcn_reference(x, A, params):
    """Pure-JAX reference mirroring the kernel's numeric policy
    (bf16 MXU operands / f32 accumulation, BN folded into layer-1 weights)."""
    B, N, D = x.shape
    F = params["w1"].shape[1]
    xf = x.reshape(B * N, D).astype(jnp.float32)
    mean = xf.mean(axis=0)
    var = (xf * xf).mean(axis=0) - mean * mean
    scale = jax.lax.rsqrt(var + BN_EPS).reshape(1, D)
    shift = -mean.reshape(1, D) * scale
    w1f, b1f = fold_bn_into_gc1(params["w1"], params["b1"], scale, shift)
    a_b = A.astype(jnp.bfloat16)

    def graph_conv(feat_bf16, w_bf16, b):
        agg = jnp.einsum('bij,bjd->bid', a_b, feat_bf16, preferred_element_type=jnp.float32)
        cat = jnp.concatenate([feat_bf16, agg.astype(jnp.bfloat16)], axis=-1)
        h = jnp.einsum('bnd,df->bnf', cat, w_bf16, preferred_element_type=jnp.float32) + b
        return jnp.maximum(h, 0.0)

    h1 = graph_conv(x.astype(jnp.bfloat16), w1f.astype(jnp.bfloat16), b1f)
    return graph_conv(h1.astype(jnp.bfloat16), params["w2"].astype(jnp.bfloat16),
                      params["b2"].reshape(1, F))


# ------------------------- main -------------------------

if __name__ == "__main__":
    # Lane-dense channels (D = F = 128); batch split into 2 grid steps (v7x megacore).
    B, N, D = 4, 32, 128
    key = jax.random.PRNGKey(0)
    kx, ka, kp = jax.random.split(key, 3)

    x = jax.random.normal(kx, (B, N, D), jnp.float32)
    A_logits = jax.random.uniform(ka, (B, N, N), jnp.float32)
    A = A_logits / A_logits.sum(axis=-1, keepdims=True)   # row-stochastic (MeanAggregator)

    params = init_params(kp, D, D)

    out = jax.block_until_ready(jax.jit(gcn_forward)(x, A, params))

    ref = gcn_reference(x, A, params)
    if not jnp.allclose(out, ref, rtol=1e-2, atol=1e-2):
        max_err = jnp.max(jnp.abs(out - ref))
        raise AssertionError(f"Pallas GCN output mismatch vs JAX reference (max abs err={max_err})")

    print("KERNEL_OK")
</pallas_src>

<mosaic_0001>
module attributes {stable_mosaic.version = 11 : i64} {
  func.func @bn_stats_kernel(%arg0: i32, %arg1: memref<128x128xf32, #tpu.memory_space<vmem>>, %arg2: memref<1x128xf32, #tpu.memory_space<vmem>>, %arg3: memref<1x128xf32, #tpu.memory_space<vmem>>, %arg4: memref<1x128xf32, #tpu.memory_space<vmem>>, %arg5: memref<1x128xf32, #tpu.memory_space<vmem>>) attributes {dimension_semantics = [#tpu.dimension_semantics<arbitrary>], iteration_bounds = array<i64: 1>, scalar_prefetch = 0 : i64, scratch_operands = 2 : i64, tpu.core_type = #tpu.core_type<tc>, window_params = [{transform_indices = @transform_0, window_bounds = array<i64: 128, 128>}, {pipeline_mode = #tpu.pipeline_mode<synchronous>, transform_indices = @transform_1, window_bounds = array<i64: 1, 128>}, {pipeline_mode = #tpu.pipeline_mode<synchronous>, transform_indices = @transform_2, window_bounds = array<i64: 1, 128>}]} {
    %c0_i32 = arith.constant 0 : i32
    %0 = arith.cmpi eq, %arg0, %c0_i32 : i32
    %1 = arith.extui %0 : i1 to i32
    %c0_i32_0 = arith.constant 0 : i32
    %2 = arith.cmpi ne, %1, %c0_i32_0 : i32
    scf.if %2 {
      %cst_13 = arith.constant 0.000000e+00 : f32
      %18 = vector.broadcast %cst_13 : f32 to vector<1x128xf32>
      %c0_14 = arith.constant 0 : index
      %c0_15 = arith.constant 0 : index
      %19 = vector.load %arg4[%c0_14, %c0_15] : memref<1x128xf32, #tpu.memory_space<vmem>>, vector<1x128xf32>
      tpu.vector_store %arg4[%c0_14, %c0_15], %18 {strides = array<i32>} : memref<1x128xf32, #tpu.memory_space<vmem>>, vector<1x128xf32>,
      %cst_16 = arith.constant 0.000000e+00 : f32
      %20 = vector.broadcast %cst_16 : f32 to vector<1x128xf32>
      %c0_17 = arith.constant 0 : index
      %c0_18 = arith.constant 0 : index
      %21 = vector.load %arg5[%c0_17, %c0_18] : memref<1x128xf32, #tpu.memory_space<vmem>>, vector<1x128xf32>
      tpu.vector_store %arg5[%c0_17, %c0_18], %20 {strides = array<i32>} : memref<1x128xf32, #tpu.memory_space<vmem>>, vector<1x128xf32>,
    } else {
    }
    %c0 = arith.constant 0 : index
    %c0_1 = arith.constant 0 : index
    %3 = vector.load %arg1[%c0, %c0_1] : memref<128x128xf32, #tpu.memory_space<vmem>>, vector<128x128xf32>
    %c0_2 = arith.constant 0 : index
    %c0_3 = arith.constant 0 : index
    %4 = vector.load %arg4[%c0_2, %c0_3] : memref<1x128xf32, #tpu.memory_space<vmem>>, vector<1x128xf32>
    %cst = arith.constant dense<0.000000e+00> : vector<128xf32>
    %5 = vector.multi_reduction <add>, %3, %cst [0] : vector<128x128xf32> to vector<128xf32>
    %6 = vector.shape_cast %5 : vector<128xf32> to vector<1x128xf32>
    %7 = arith.addf %4, %6 : vector<1x128xf32>
    %c0_4 = arith.constant 0 : index
    %c0_5 = arith.constant 0 : index
    %8 = vector.load %arg4[%c0_4, %c0_5] : memref<1x128xf32, #tpu.memory_space<vmem>>, vector<1x128xf32>
    tpu.vector_store %arg4[%c0_4, %c0_5], %7 {strides = array<i32>} : memref<1x128xf32, #tpu.memory_space<vmem>>, vector<1x128xf32>,
    %c0_6 = arith.constant 0 : index
    %c0_7 = arith.constant 0 : index
    %9 = vector.load %arg5[%c0_6, %c0_7] : memref<1x128xf32, #tpu.memory_space<vmem>>, vector<1x128xf32>
    %10 = arith.mulf %3, %3 : vector<128x128xf32>
    %cst_8 = arith.constant dense<0.000000e+00> : vector<128xf32>
    %11 = vector.multi_reduction <add>, %10, %cst_8 [0] : vector<128x128xf32> to vector<128xf32>
    %12 = vector.shape_cast %11 : vector<128xf32> to vector<1x128xf32>
    %13 = arith.addf %9, %12 : vector<1x128xf32>
    %c0_9 = arith.constant 0 : index
    %c0_10 = arith.constant 0 : index
    %14 = vector.load %arg5[%c0_9, %c0_10] : memref<1x128xf32, #tpu.memory_space<vmem>>, vector<1x128xf32>
    tpu.vector_store %arg5[%c0_9, %c0_10], %13 {strides = array<i32>} : memref<1x128xf32, #tpu.memory_space<vmem>>, vector<1x128xf32>,
    %c0_i32_11 = arith.constant 0 : i32
    %15 = arith.cmpi eq, %arg0, %c0_i32_11 : i32
    %16 = arith.extui %15 : i1 to i32
    %c0_i32_12 = arith.constant 0 : i32
    %17 = arith.cmpi ne, %16, %c0_i32_12 : i32
    scf.if %17 {
      %c0_13 = arith.constant 0 : index
      %c0_14 = arith.constant 0 : index
      %18 = vector.load %arg4[%c0_13, %c0_14] : memref<1x128xf32, #tpu.memory_space<vmem>>, vector<1x128xf32>
      %cst_15 = arith.constant 7.812500e-03 : f32
      %19 = vector.broadcast %cst_15 : f32 to vector<1x128xf32>
      %20 = arith.mulf %18, %19 : vector<1x128xf32>
      %c0_16 = arith.constant 0 : index
      %c0_17 = arith.constant 0 : index
      %21 = vector.load %arg5[%c0_16, %c0_17] : memref<1x128xf32, #tpu.memory_space<vmem>>, vector<1x128xf32>
      %cst_18 = arith.constant 7.812500e-03 : f32
      %22 = vector.broadcast %cst_18 : f32 to vector<1x128xf32>
      %23 = arith.mulf %21, %22 : vector<1x128xf32>
      %24 = arith.mulf %20, %20 : vector<1x128xf32>
      %25 = arith.subf %23, %24 : vector<1x128xf32>
      %cst_19 = arith.constant 9.99999974E-6 : f32
      %26 = vector.broadcast %cst_19 : f32 to vector<1x128xf32>
      %27 = arith.addf %25, %26 : vector<1x128xf32>
      %28 = math.rsqrt %27 : vector<1x128xf32>
      %c0_20 = arith.constant 0 : index
      %c0_21 = arith.constant 0 : index
      %29 = vector.load %arg2[%c0_20, %c0_21] : memref<1x128xf32, #tpu.memory_space<vmem>>, vector<1x128xf32>
      tpu.vector_store %arg2[%c0_20, %c0_21], %28 {strides = array<i32>} : memref<1x128xf32, #tpu.memory_space<vmem>>, vector<1x128xf32>,
      %cst_22 = arith.constant 0.000000e+00 : f32
      %30 = vector.broadcast %cst_22 : f32 to vector<1x128xf32>
      %31 = arith.subf %30, %20 : vector<1x128xf32>
      %32 = arith.mulf %31, %28 : vector<1x128xf32>
      %c0_23 = arith.constant 0 : index
      %c0_24 = arith.constant 0 : index
      %33 = vector.load %arg3[%c0_23, %c0_24] : memref<1x128xf32, #tpu.memory_space<vmem>>, vector<1x128xf32>
      tpu.vector_store %arg3[%c0_23, %c0_24], %32 {strides = array<i32>} : memref<1x128xf32, #tpu.memory_space<vmem>>, vector<1x128xf32>,
    } else {
    }
    return
  }
  func.func @transform_0(%arg0: i32) -> (i32, i32) {
    %c0_i32 = arith.constant 0 : i32
    %c0_i32_0 = arith.constant 0 : i32
    return %arg0, %c0_i32 : i32, i32
  }
  func.func @transform_1(%arg0: i32) -> (i32, i32) {
    %c0_i32 = arith.constant 0 : i32
    %c0_i32_0 = arith.constant 0 : i32
    %c0_i32_1 = arith.constant 0 : i32
    return %c0_i32, %c0_i32_0 : i32, i32
  }
  func.func @transform_2(%arg0: i32) -> (i32, i32) {
    %c0_i32 = arith.constant 0 : i32
    %c0_i32_0 = arith.constant 0 : i32
    %c0_i32_1 = arith.constant 0 : i32
    return %c0_i32, %c0_i32_0 : i32, i32
  }
}

module attributes {stable_mosaic.version = 11 : i64} {
  func.func @gcn_kernel(%arg0: i32, %arg1: memref<2x32x128xf32, #tpu.memory_space<vmem>>, %arg2: memref<2x32x32xbf16, #tpu.memory_space<vmem>>, %arg3: memref<256x128xbf16, #tpu.memory_space<vmem>>, %arg4: memref<1x128xf32, #tpu.memory_space<vmem>>, %arg5: memref<256x128xbf16, #tpu.memory_space<vmem>>, %arg6: memref<1x128xf32, #tpu.memory_space<vmem>>, %arg7: memref<2x32x128xf32, #tpu.memory_space<vmem>>) attributes {dimension_semantics = [#tpu.dimension_semantics<parallel>], iteration_bounds = array<i64: 2>, scalar_prefetch = 0 : i64, scratch_operands = 0 : i64, tpu.core_type = #tpu.core_type<tc>, window_params = [{transform_indices = @transform_0, window_bounds = array<i64: 2, 32, 128>}, {transform_indices = @transform_1, window_bounds = array<i64: 2, 32, 32>}, {pipeline_mode = #tpu.pipeline_mode<synchronous>, transform_indices = @transform_2, window_bounds = array<i64: 256, 128>}, {pipeline_mode = #tpu.pipeline_mode<synchronous>, transform_indices = @transform_3, window_bounds = array<i64: 1, 128>}, {pipeline_mode = #tpu.pipeline_mode<synchronous>, transform_indices = @transform_4, window_bounds = array<i64: 256, 128>}, {pipeline_mode = #tpu.pipeline_mode<synchronous>, transform_indices = @transform_5, window_bounds = array<i64: 1, 128>}, {transform_indices = @transform_6, window_bounds = array<i64: 2, 32, 128>}]} {
    %c0 = arith.constant 0 : index
    %c0_0 = arith.constant 0 : index
    %c0_1 = arith.constant 0 : index
    %0 = vector.load %arg2[%c0, %c0_0, %c0_1] : memref<2x32x32xbf16, #tpu.memory_space<vmem>>, vector<2x32x32xbf16>
    %c0_2 = arith.constant 0 : index
    %c0_3 = arith.constant 0 : index
    %c0_4 = arith.constant 0 : index
    %1 = vector.load %arg1[%c0_2, %c0_3, %c0_4] : memref<2x32x128xf32, #tpu.memory_space<vmem>>, vector<2x32x128xf32>
    %2 = vector.shape_cast %1 : vector<2x32x128xf32> to vector<64x128xf32>
    %3 = arith.truncf %2 : vector<64x128xf32> to vector<64x128xbf16>
    %4 = vector.shape_cast %3 : vector<64x128xbf16> to vector<2x32x128xbf16>
    "tpu.trace_start"() <{level = 10 : i32, message = "bij,bjd->bid"}> : () -> ()
    %cst = arith.constant dense<0.000000e+00> : vector<2x32x128xf32>
    %5 = tpu.matmul %0, %4, %cst {dimension_numbers = #tpu.dot_dimension_numbers<[2], [1], [1], [2], [0, 0, 0, 1, 1, 2], [0], [0]>} : vector<2x32x32xbf16>, vector<2x32x128xbf16>, vector<2x32x128xf32> -> vector<2x32x128xf32>
    "tpu.trace_stop"() : () -> ()
    %6 = arith.truncf %5 : vector<2x32x128xf32> to vector<2x32x128xbf16>
    %7 = vector.shape_cast %6 : vector<2x32x128xbf16> to vector<64x128xbf16>
    %8 = tpu.concatenate %3, %7 in 1 : vector<64x128xbf16>, vector<64x128xbf16> -> vector<64x256xbf16>
    %c0_5 = arith.constant 0 : index
    %c0_6 = arith.constant 0 : index
    %9 = vector.load %arg3[%c0_5, %c0_6] : memref<256x128xbf16, #tpu.memory_space<vmem>>, vector<256x128xbf16>
    %cst_7 = arith.constant dense<0.000000e+00> : vector<64x128xf32>
    %10 = tpu.matmul %8, %9, %cst_7 {dimension_numbers = #tpu.dot_dimension_numbers<[1], [0], [0], [1], [0, 0, 1, 1], [], []>} : vector<64x256xbf16>, vector<256x128xbf16>, vector<64x128xf32> -> vector<64x128xf32>
    %c0_8 = arith.constant 0 : index
    %c0_9 = arith.constant 0 : index
    %11 = vector.load %arg4[%c0_8, %c0_9] : memref<1x128xf32, #tpu.memory_space<vmem>>, vector<1x128xf32>
    %12 = vector.broadcast %11 : vector<1x128xf32> to vector<64x128xf32>
    %13 = arith.addf %10, %12 : vector<64x128xf32>
    %cst_10 = arith.constant 0.000000e+00 : f32
    %14 = vector.broadcast %cst_10 : f32 to vector<64x128xf32>
    %15 = arith.maximumf %13, %14 : vector<64x128xf32>
    %16 = arith.truncf %15 : vector<64x128xf32> to vector<64x128xbf16>
    %17 = vector.shape_cast %16 : vector<64x128xbf16> to vector<2x32x128xbf16>
    "tpu.trace_start"() <{level = 10 : i32, message = "bij,bjd->bid"}> : () -> ()
    %cst_11 = arith.constant dense<0.000000e+00> : vector<2x32x128xf32>
    %18 = tpu.matmul %0, %17, %cst_11 {dimension_numbers = #tpu.dot_dimension_numbers<[2], [1], [1], [2], [0, 0, 0, 1, 1, 2], [0], [0]>} : vector<2x32x32xbf16>, vector<2x32x128xbf16>, vector<2x32x128xf32> -> vector<2x32x128xf32>
    "tpu.trace_stop"() : () -> ()
    %19 = arith.truncf %18 : vector<2x32x128xf32> to vector<2x32x128xbf16>
    %20 = vector.shape_cast %19 : vector<2x32x128xbf16> to vector<64x128xbf16>
    %21 = tpu.concatenate %16, %20 in 1 : vector<64x128xbf16>, vector<64x128xbf16> -> vector<64x256xbf16>
    %c0_12 = arith.constant 0 : index
    %c0_13 = arith.constant 0 : index
    %22 = vector.load %arg5[%c0_12, %c0_13] : memref<256x128xbf16, #tpu.memory_space<vmem>>, vector<256x128xbf16>
    %cst_14 = arith.constant dense<0.000000e+00> : vector<64x128xf32>
    %23 = tpu.matmul %21, %22, %cst_14 {dimension_numbers = #tpu.dot_dimension_numbers<[1], [0], [0], [1], [0, 0, 1, 1], [], []>} : vector<64x256xbf16>, vector<256x128xbf16>, vector<64x128xf32> -> vector<64x128xf32>
    %c0_15 = arith.constant 0 : index
    %c0_16 = arith.constant 0 : index
    %24 = vector.load %arg6[%c0_15, %c0_16] : memref<1x128xf32, #tpu.memory_space<vmem>>, vector<1x128xf32>
    %25 = vector.broadcast %24 : vector<1x128xf32> to vector<64x128xf32>
    %26 = arith.addf %23, %25 : vector<64x128xf32>
    %cst_17 = arith.constant 0.000000e+00 : f32
    %27 = vector.broadcast %cst_17 : f32 to vector<64x128xf32>
    %28 = arith.maximumf %26, %27 : vector<64x128xf32>
    %29 = vector.shape_cast %28 : vector<64x128xf32> to vector<2x32x128xf32>
    %c0_18 = arith.constant 0 : index
    %c0_19 = arith.constant 0 : index
    %c0_20 = arith.constant 0 : index
    %30 = vector.load %arg7[%c0_18, %c0_19, %c0_20] : memref<2x32x128xf32, #tpu.memory_space<vmem>>, vector<2x32x128xf32>
    tpu.vector_store %arg7[%c0_18, %c0_19, %c0_20], %29 {strides = array<i32>} : memref<2x32x128xf32, #tpu.memory_space<vmem>>, vector<2x32x128xf32>,
    return
  }
  func.func @transform_0(%arg0: i32) -> (i32, i32, i32) {
    %c0_i32 = arith.constant 0 : i32
    %c0_i32_0 = arith.constant 0 : i32
    %c0_i32_1 = arith.constant 0 : i32
    return %arg0, %c0_i32, %c0_i32_0 : i32, i32, i32
  }
  func.func @transform_1(%arg0: i32) -> (i32, i32, i32) {
    %c0_i32 = arith.constant 0 : i32
    %c0_i32_0 = arith.constant 0 : i32
    %c0_i32_1 = arith.constant 0 : i32
    return %arg0, %c0_i32, %c0_i32_0 : i32, i32, i32
  }
  func.func @transform_2(%arg0: i32) -> (i32, i32) {
    %c0_i32 = arith.constant 0 : i32
    %c0_i32_0 = arith.constant 0 : i32
    %c0_i32_1 = arith.constant 0 : i32
    return %c0_i32, %c0_i32_0 : i32, i32
  }
  func.func @transform_3(%arg0: i32) -> (i32, i32) {
    %c0_i32 = arith.constant 0 : i32
    %c0_i32_0 = arith.constant 0 : i32
    %c0_i32_1 = arith.constant 0 : i32
    return %c0_i32, %c0_i32_0 : i32, i32
  }
  func.func @transform_4(%arg0: i32) -> (i32, i32) {
    %c0_i32 = arith.constant 0 : i32
    %c0_i32_0 = arith.constant 0 : i32
    %c0_i32_1 = arith.constant 0 : i32
    return %c0_i32, %c0_i32_0 : i32, i32
  }
  func.func @transform_5(%arg0: i32) -> (i32, i32) {
    %c0_i32 = arith.constant 0 : i32
    %c0_i32_0 = arith.constant 0 : i32
    %c0_i32_1 = arith.constant 0 : i32
    return %c0_i32, %c0_i32_0 : i32, i32
  }
  func.func @transform_6(%arg0: i32) -> (i32, i32, i32) {
    %c0_i32 = arith.constant 0 : i32
    %c0_i32_0 = arith.constant 0 : i32
    %c0_i32_1 = arith.constant 0 : i32
    return %arg0, %c0_i32, %c0_i32_0 : i32, i32, i32
  }
}

</mosaic_0001>

<bundles_post_ra>
// kernel: gcn_forward.2
= control target key start
LH: loop header
LB: loop body
LE: loop exit
PB: predicated region body
PF: predicated region fallthrough
CT: control target
= control target key end

     0   :  { %8 = vsyncpa [#allocation5], 0  ;;  %s162_s9 = smov [#allocation4]   ;;  %s190_s0 = inlined_call_operand.hbm [shape: f32[128,128], index: 0, kind: input, shape index: {}]   ;;  %s191_s1 = inlined_call_operand.vmem [shape: f32[1,128], index: 1, kind: output, shape index: {0}]   ;;  %s192_s2 = inlined_call_operand.vmem [shape: f32[1,128], index: 2, kind: output, shape index: {1}]  }
   0x1   :  { %s14_s10 = sshll.u32 %s162_s9, 4  ;;  %s15_s10 = int_to_ptr.vmem [resolvable:$true] %s14_s10 }
   0x2   :  { %s148_s11 = scalar_lea.vmem %s15_s10, 2048  ;;  %p153_p1 = scmp.lt.s32.totalorder %s15_s10, %s15_s10 }
   0x3   :  { %p149_p0 = scmp.ne.s32.totalorder %s15_s10, %s148_s11  ;;  %p154_p2 = scmp.lt.s32.totalorder %s148_s11, %s148_s11 }
   0x5   :  { %p155_p3 = por %p154_p2, %p153_p1 }
   0x7   :  { %p156_p4 = pnand %p155_p3, %p149_p0 }
   0x9   :  { %159 = shalt.err (!%p156_p4)
}
   0xa   :  { %s163_s12 = smov 128   ;;  %s164_s13 = smov 8  }
   0xb   :  { %20 = dma.hbm_to_vmem [thread:$0]  %s190_s0, 2048, %s15_s10, [#allocation5], %s163_s12, %s163_s12, %s164_s13  }
   0xc   :  { %160 = dma.done.wait [#allocation5], 2048  }
   0xd   :  { %161 = vsyncadd [#allocation5], 4294965248  ;;  %v165_v0 = vmov 0.0   ;;  %v30_v1 = vld [vmem:[#allocation4] sm:$0xff]  ;;  %v31_v2 = vld [vmem:[#allocation4 + $0x8] sm:$0xff] }
   0xe   :  { %28 = vst [vmem:[#allocation2] sm:$0x1] %v165_v0  ;;  %29 = vst [vmem:[#allocation3] sm:$0x1] %v165_v0  ;;  %v32_v3 = vld [vmem:[#allocation4 + $0x10] sm:$0xff]  ;;  %v33_v4 = vld [vmem:[#allocation4 + $0x18] sm:$0xff]  ;;  %v47_v5 = vadd.f32 %v31_v2, %v30_v1  ;;  %v71_v6 = vmul.f32 %v30_v1, %v30_v1  ;;  %v72_v7 = vmul.f32 %v31_v2, %v31_v2 }
   0xf   :  { %v73_v8 = vmul.f32 %v32_v3, %v32_v3  ;;  %v34_v9 = vld [vmem:[#allocation4 + $0x20] sm:$0xff]  ;;  %v74_v11 = vmul.f32 %v33_v4, %v33_v4  ;;  %v35_v13 = vld [vmem:[#allocation4 + $0x28] sm:$0xff]  ;;  %v36_v17 = vld [vmem:[#allocation4 + $0x30] sm:$0xff] }
  0x10   :  { %v48_v10 = vadd.f32 %v47_v5, %v32_v3  ;;  %v87_v12 = vadd.f32 %v72_v7, %v71_v6  ;;  %v75_v15 = vmul.f32 %v34_v9, %v34_v9  ;;  %v76_v19 = vmul.f32 %v35_v13, %v35_v13  ;;  %v37_v21 = vld [vmem:[#allocation4 + $0x38] sm:$0xff]  ;;  %v38_v25 = vld [vmem:[#allocation4 + $0x40] sm:$0xff]  ;;  %v39_v29 = vld [vmem:[#allocation4 + $0x48] sm:$0xff] }
  0x11   :  { %v77_v23 = vmul.f32 %v36_v17, %v36_v17  ;;  %v78_v27 = vmul.f32 %v37_v21, %v37_v21  ;;  %v79_v31 = vmul.f32 %v38_v25, %v38_v25  ;;  %v40_v33 = vld [vmem:[#allocation4 + $0x50] sm:$0xff]  ;;  %v80_v35 = vmul.f32 %v39_v29, %v39_v29  ;;  %v41_v37 = vld [vmem:[#allocation4 + $0x58] sm:$0xff]  ;;  %v42_v41 = vld [vmem:[#allocation4 + $0x60] sm:$0xff] }
  0x12   :  { %v49_v14 = vadd.f32 %v48_v10, %v33_v4  ;;  %v88_v16 = vadd.f32 %v87_v12, %v73_v8  ;;  %v81_v39 = vmul.f32 %v40_v33, %v40_v33  ;;  %v82_v43 = vmul.f32 %v41_v37, %v41_v37  ;;  %v43_v45 = vld [vmem:[#allocation4 + $0x68] sm:$0xff]  ;;  %v44_v49 = vld [vmem:[#allocation4 + $0x70] sm:$0xff]  ;;  %v45_v53 = vld [vmem:[#allocation4 + $0x78] sm:$0xff] }
  0x13   :  { %v83_v47 = vmul.f32 %v42_v41, %v42_v41  ;;  %v84_v51 = vmul.f32 %v43_v45, %v43_v45  ;;  %v85_v55 = vmul.f32 %v44_v49, %v44_v49  ;;  %v86_v58 = vmul.f32 %v45_v53, %v45_v53 }
  0x14   :  { %v50_v18 = vadd.f32 %v49_v14, %v34_v9  ;;  %v89_v20 = vadd.f32 %v88_v16, %v74_v11 }
  0x15   :  { %v46_v7 = vld [vmem:[#allocation2] sm:$0x1]  ;;  %v70_v12 = vld [vmem:[#allocation3] sm:$0x1] }
  0x16   :  { %v51_v22 = vadd.f32 %v50_v18, %v35_v13  ;;  %v90_v24 = vadd.f32 %v89_v20, %v75_v15 }
  0x18   :  { %v52_v26 = vadd.f32 %v51_v22, %v36_v17  ;;  %v91_v28 = vadd.f32 %v90_v24, %v76_v19 }
  0x1a   :  { %v53_v30 = vadd.f32 %v52_v26, %v37_v21  ;;  %v92_v32 = vadd.f32 %v91_v28, %v77_v23 }
  0x1c   :  { %v54_v34 = vadd.f32 %v53_v30, %v38_v25  ;;  %v93_v36 = vadd.f32 %v92_v32, %v78_v27 }
  0x1e   :  { %v55_v38 = vadd.f32 %v54_v34, %v39_v29  ;;  %v94_v40 = vadd.f32 %v93_v36, %v79_v31 }
  0x20   :  { %v56_v42 = vadd.f32 %v55_v38, %v40_v33  ;;  %v95_v44 = vadd.f32 %v94_v40, %v80_v35 }
  0x22   :  { %v57_v46 = vadd.f32 %v56_v42, %v41_v37  ;;  %v96_v48 = vadd.f32 %v95_v44, %v81_v39 }
  0x24   :  { %v58_v50 = vadd.f32 %v57_v46, %v42_v41  ;;  %v97_v52 = vadd.f32 %v96_v48, %v82_v43 }
  0x26   :  { %v59_v54 = vadd.f32 %v58_v50, %v43_v45  ;;  %v98_v56 = vadd.f32 %v97_v52, %v83_v47 }
  0x28   :  { %v60_v57 = vadd.f32 %v59_v54, %v44_v49  ;;  %v99_v59 = vadd.f32 %v98_v56, %v84_v51 }
  0x2a   :  { %v61_v60 = vadd.f32 %v60_v57, %v45_v53  ;;  %v100_v61 = vadd.f32 %v99_v59, %v85_v55 }
  0x2c   :  { %v62_v62 = vrot.slane %v61_v60, 4  ;;  %v101_v63 = vadd.f32 %v100_v61, %v86_v58 }
  0x2e   :  { %v63_v0 = vadd.f32 %v62_v62, %v61_v60  ;;  %v102_v1 = vrot.slane %v101_v63, 4 }
  0x30   :  { %v64_v2 = vrot.slane %v63_v0, 2  ;;  %v103_v3 = vadd.f32 %v102_v1, %v101_v63 }
  0x32   :  { %v65_v4 = vadd.f32 %v64_v2, %v63_v0  ;;  %v104_v5 = vrot.slane %v103_v3, 2 }
  0x34   :  { %v66_v6 = vrot.slane %v65_v4, 1  ;;  %v105_v8 = vadd.f32 %v104_v5, %v103_v3 }
  0x36   :  { %v67_v9 = vadd.f32 %v66_v6, %v65_v4  ;;  %v106_v10 = vrot.slane %v105_v8, 1 }
  0x38   :  { %v68_v11 = vadd.f32 %v67_v9, %v46_v7  ;;  %v107_v13 = vadd.f32 %v106_v10, %v105_v8 }
  0x3a   :  { %69 = vst [vmem:[#allocation2] sm:$0x1] %v68_v11  ;;  %v108_v14 = vadd.f32 %v107_v13, %v70_v12 }
  0x3c   :  { %109 = vst [vmem:[#allocation3] sm:$0x1] %v108_v14 }
  0x41   :  { %v113_v15 = vld [vmem:[#allocation2] sm:$0x1] }
  0x42   :  { %v114_v16 = vmul.f32 0.0078125, %v113_v15 }
  0x43   :  { %v115_v17 = vld [vmem:[#allocation3] sm:$0x1] }
  0x44   :  { %v117_v18 = vmul.f32 %v114_v16, %v114_v16  ;;  %v116_v19 = vmul.f32 0.0078125, %v115_v17  ;;  %v122_v22 = vsub.f32 0.0, %v114_v16 }
  0x46   :  { %v118_v20 = vsub.f32 %v116_v19, %v117_v18 }
  0x48   :  { %v119_v21 = vadd.f32 1e-05, %v118_v20 }
  0x4a   :  { %138 = vrsqrt.f32 %v119_v21 }
  0x57   :  { %v139_v23 = vpop.eup %138 }
  0x58   :  { %121 = vst [vmem:[%s191_s1] sm:$0x1] %v139_v23  ;;  %v123_v24 = vmul.f32 %v139_v23, %v122_v22 }
  0x5a   :  { %124 = vst [vmem:[%s192_s2] sm:$0x1] %v123_v24 }
  0x5b   :  { %133 = vsyncpa [#allocation5], 1 }

// kernel: gcn_forward.3
= control target key start
LH: loop header
LB: loop body
LE: loop exit
PB: predicated region body
PF: predicated region fallthrough
CT: control target
= control target key end

     0   :  { %11 = vsyncpa [#allocation3], 0  ;;  %s1694_s0 = inlined_call_operand.vmem [shape: f32[4,32,128], index: 0, kind: input, shape index: {}]   ;;  %s1695_s1 = inlined_call_operand.vmem [shape: bf16[4,32,32], index: 1, kind: input, shape index: {}]   ;;  %s1696_s2 = inlined_call_operand.vmem [shape: bf16[256,128], index: 2, kind: input, shape index: {}]   ;;  %s1697_s3 = inlined_call_operand.vmem [shape: f32[1,128], index: 3, kind: input, shape index: {}]   ;;  %s1698_s4 = inlined_call_operand.vmem [shape: bf16[256,128], index: 4, kind: input, shape index: {}]   ;;  %s1699_s5 = inlined_call_operand.vmem [shape: f32[1,128], index: 5, kind: input, shape index: {}]   ;;  %s1700_s6 = inlined_call_operand.hbm [shape: f32[4,32,128], index: 6, kind: output, shape index: {}]  }
   0x1   :  { %13 = vsyncpa [#allocation3 + $0x1], 0  ;;  %s1428_s21 = smov 0   ;;  %s1430_s22 = smov 0  }
   0x2   :  { %s1432_s23 = smov 0   ;;  %s1434_s24 = smov 0  }
   0x3 LB: > { %s1449_s25 = sadd.s32 4294967295, %s1388_s24   ;;  %s1056_s26 = sadd.s32 4294967294, %s1388_s24   ;;  %s1388_s24 = sphi %s1434_s24, %s1706_s24   ;;  %s1384_s23 = sphi %s1432_s23, %s1705_s23   ;;  %s1380_s22 = sphi %s1430_s22, %s1704_s22   ;;  %s1376_s21 = sphi %s1428_s21, %s1703_s21  }
   0x4   : > { %s1453_s27 = sadd.s32 1, %s1388_s24   ;;  %s162_s28 = sadd.s32 1, %s1384_s23 }
   0x5   : > { %s159_s29 = ssub.s32 %s1388_s24, %s1453_s27  ;;  %p172_p0 = scmp.ne.s32.totalorder %s1384_s23, %s1380_s22 }
   0x6   : > { %p160_p1 = scmp.eq.s32.totalorder %s159_s29, 0  ;;  %p173_p2 = scmp.eq.s32.totalorder %s1449_s25, 1 }
   0x7   : > { %p178_p3 = scmp.ne.s32.totalorder %s1380_s22, %s1376_s21  ;;  %p179_p4 = scmp.eq.s32.totalorder %s1056_s26, 1 }
   0x8   : > { %s1464_s30 = scalar_select %p160_p1, %s1384_s23, %s162_s28  }
   0x9   : > { %p1466_p5 = por %p173_p2, %p172_p0  ;;  %p1470_p6 = por %p179_p4, %p178_p3 }
   0xa   : > { %p1059_p7 = scmp.ge.s32.totalorder %s1388_s24, 1  ;;  %p229_p8 = scmp.lt.s32.totalorder %s1388_s24, 3 }
   0xc   : > { %p230_p9 = pnand %p1059_p7, %p229_p8 }
   0xd   : > { %s1061_s9 = sshll.u32 (!%p230_p9), %s1449_s25, 1 }
   0xe   : > { %233 = sbr.rel (%p230_p9) target bundleno = 903 (0x387), region = 44  ;;  %p267_p10 = scmp.lt.s32.totalorder (!%p230_p9), %s1061_s9, 3 }
  0x13   : > { %s1708_s9 = smov (!%p267_p10, %s1061_s9), 3  ;;  %vm312_vm0 = vcmask 261120   ;;  %v1296_v15 = vld [vmem:[%s1696_s2 + $0x78] sm:$0xff]   ;;  %v1298_v18 = vld [vmem:[%s1696_s2 + $0x70] sm:$0xff]   ;;  %v1300_v20 = vld [vmem:[%s1696_s2 + $0x68] sm:$0xff]  }
  0x14   : > { %s1119_s10 = sshll.u32 %s1708_s9, 5  ;;  %s1120_s11 = sshll.u32 %s1708_s9, 4  ;;  %v1297_v17 = vld [vmem:[%s1696_s2 + $0x38] sm:$0xff]   ;;  %v1299_v19 = vld [vmem:[%s1696_s2 + $0x30] sm:$0xff]   ;;  %v1301_v21 = vld [vmem:[%s1696_s2 + $0x28] sm:$0xff]  }
  0x15   : > { %s271_s14 = scalar_lea.vmem %s1694_s0, %s1119_s10  ;;  %s278_s17 = scalar_lea.vmem %s1695_s1, %s1120_s11  ;;  %v1302_v22 = vld [vmem:[%s1696_s2 + $0x60] sm:$0xff]   ;;  %v1304_v24 = vld [vmem:[%s1696_s2 + $0x58] sm:$0xff]   ;;  %v1306_v26 = vld [vmem:[%s1696_s2 + $0x50] sm:$0xff]  }
  0x16   : > { %v292_v0 = vld [vmem:[%s271_s14 + $0x10] sm:$0xff]  ;;  %v293_v1 = vld [vmem:[%s271_s14 + $0x18] sm:$0xff]  ;;  %v290_v2 = vld [vmem:[%s271_s14] sm:$0xff]  ;;  %s263_s9 = sand.u32 1, %s1380_s22  }
  0x17   : > { %v1483_v3 = vpack.c.bf16 %v293_v1, %v292_v0  ;;  %v291_v4 = vld [vmem:[%s271_s14 + $0x8] sm:$0xff]  ;;  %v1292_v6 = vld [vmem:[%s278_s17] sm:$0xff]   ;;  %v296_v7 = vld [vmem:[%s271_s14 + $0x30] sm:$0xff]  ;;  %s1060_s12 = sshll.u32 %s263_s9, 6  ;;  %s1654_s19 = scalar_lea.sflag [#allocation3], %s263_s9 }
  0x18   : > { %v1485_v5 = vpack.c.bf16 %v291_v4, %v290_v2  ;;  %v297_v8 = vld [vmem:[%s271_s14 + $0x38] sm:$0xff]  ;;  %1223 = vmatprep.mubr.msk.bf16.mxu0 %vm312_vm0, %v1292_v6  ;;  %1239 = vmatprep.mubr.msk.bf16.mxu1 %vm312_vm0, %v1292_v6  ;;  %v294_v10 = vld [vmem:[%s271_s14 + $0x20] sm:$0xff]  ;;  %v295_v11 = vld [vmem:[%s271_s14 + $0x28] sm:$0xff]  ;;  %s1633_s13 = scalar_lea.vmem [#allocation2], %s1060_s12  ;;  %s1122_s14 = sshll.u32 %s1449_s25, 10 }
  0x19   : > { %1219 = vmatprep.subr.bf16.mxu0 %v1483_v3  ;;  %v1491_v9 = vpack.c.bf16 %v297_v8, %v296_v7  ;;  %v1494_v12 = vld [vmem:[%s278_s17 + $0x8] sm:$0xff]   ;;  %v1497_v13 = vld [vmem:[%s278_s17 + $0x10] sm:$0xff]   ;;  %v300_v14 = vpack.c.bf16 %v295_v11, %v294_v10  ;;  %v1508_v16 = vld [vmem:[%s278_s17 + $0x18] sm:$0xff]   ;;  %s982_s15 = sshll.u32 %s1633_s13, 4  ;;  %s1647_s18 = scalar_lea.hbm %s1700_s6, %s1122_s14  ;;  %s1649_s15 = int_to_ptr.vmem [resolvable:$true] %s982_s15 }
  0x1a   : > { %1220 = vmatpush3.bf16.msra.mxu0 %v1483_v3  ;;  %v1303_v23 = vld [vmem:[%s1696_s2 + $0x20] sm:$0xff]   ;;  %v1305_v25 = vld [vmem:[%s1696_s2 + $0x18] sm:$0xff]   ;;  %v1307_v27 = vld [vmem:[%s1696_s2 + $0x10] sm:$0xff]   ;;  %s1328_s20 = scalar_lea.vmem %s1649_s15, 1024  ;;  %s1390_s25 = smov [#allocation2]  }
  0x1b   : > { %1221 = vmatprep.subr.bf16.mxu0 %v1485_v5  ;;  %v1308_v28 = vld [vmem:[%s1696_s2 + $0x48] sm:$0xff]   ;;  %v1310_v30 = vld [vmem:[%s1696_s2 + $0x40] sm:$0xff]   ;;  %p1329_p11 = scmp.ne.s32.totalorder %s1649_s15, %s1328_s20  ;;  %s1332_s26 = sshll.u32 %s1390_s25, 4  ;;  %s1333_s26 = int_to_ptr.vmem [resolvable:$false] %s1332_s26 }
  0x1c   : > { %v1309_v29 = vld [vmem:[%s1696_s2 + $0x8] sm:$0xff]   ;;  %v1311_v31 = vld [vmem:[%s1696_s2] sm:$0xff]   ;;  %s1334_s28 = scalar_lea.vmem %s1333_s26, 2048  ;;  %p1335_p0 = scmp.lt.s32.totalorder %s1649_s15, %s1333_s26 }
  0x1d   : > { %v1075_v54 = vld [vmem:[%s1697_s3] ss:$0 sm:$0xff]  ;;  %p1330_p12 = pnand %p1329_p11, %p1466_p5  ;;  %p1336_p1 = scmp.lt.s32.totalorder %s1334_s28, %s1328_s20 }
  0x1e   : > { %1222 = vmatpush3.bf16.msra.mxu0 %v1485_v5 }
  0x1f   : > { %1227 = vmatprep.subr.bf16.mxu0 %v1491_v9  ;;  %p1331_p13 = pneg %p1330_p12  ;;  %p1337_p2 = por %p1336_p1, %p1335_p0 }
  0x21   : > { %1224 = vmatmul.mubr.msk.bf16.vlgmr.msra.gmra.mxu0 %vm312_vm0, %v1494_v12  ;;  %p1338_p3 = pnand %p1337_p2, %p1331_p13 }
  0x22   : > { %1228 = vmatpush3.bf16.msra.mxu0 %v1491_v9  ;;  %1231 = vmatprep.mubr.msk.bf16.mxu0 %vm312_vm0, %v1497_v13 }
  0x23   : > { %1229 = vmatprep.subr.bf16.mxu0 %v300_v14 }
  0x26   : > { %1230 = vmatpush3.bf16.msra.mxu0 %v300_v14 }
  0x27   : > { %1131 = vmatprep.subr.bf16.mxu0 %v1296_v15 }
  0x29   : > { %1232 = vmatmul.mubr.msk.bf16.vlgmr.msra.gmra.mxu0 %vm312_vm0, %v1508_v16 }
  0x2a   : > { %1132 = vmatpush3.bf16.msra.mxu0 %v1297_v17 }
  0x2b   : > { %1133 = vmatprep.subr.bf16.mxu0 %v1298_v18 }
  0x2e   : > { %1134 = vmatpush3.bf16.msra.mxu0 %v1299_v19 }
  0x2f   : > { %1135 = vmatprep.subr.bf16.mxu0 %v1300_v20 }
  0x32   : > { %1136 = vmatpush3.bf16.msra.mxu0 %v1301_v21 }
  0x33   : > { %1137 = vmatprep.subr.bf16.mxu0 %v1302_v22 }
  0x36   : > { %1138 = vmatpush3.bf16.msra.mxu0 %v1303_v23 }
  0x37   : > { %1139 = vmatprep.subr.bf16.mxu0 %v1304_v24 }
  0x3a   : > { %1140 = vmatpush3.bf16.msra.mxu0 %v1305_v25 }
  0x3b   : > { %1141 = vmatprep.subr.bf16.mxu0 %v1306_v26 }
  0x3e   : > { %1142 = vmatpush3.bf16.msra.mxu0 %v1307_v27 }
  0x3f   : > { %1143 = vmatprep.subr.bf16.mxu0 %v1308_v28  ;;  %v1312_v28 = vld [vmem:[%s1698_s4 + $0x78] sm:$0xff]  }
  0x42   : > { %1144 = vmatpush3.bf16.msra.mxu0 %v1309_v29  ;;  %v1315_v29 = vld [vmem:[%s1698_s4 + $0x30] sm:$0xff]  }
  0x43   : > { %1145 = vmatprep.subr.bf16.mxu0 %v1310_v30  ;;  %v1316_v30 = vld [vmem:[%s1698_s4 + $0x68] sm:$0xff]  }
  0x46   : > { %1146 = vmatpush3.bf16.msra.mxu0 %v1311_v31  ;;  %v1317_v31 = vld [vmem:[%s1698_s4 + $0x28] sm:$0xff]  }
  0xe1   : > { %v1225_v32 = vpop.f32.mrf.mxu0 }
  0xe3   : > { %v353_v33 = vpop.f32.mrf.mxu0 }
  0xe5   : > { %v1226_v34 = vpop.f32.mrf.mxu0 }
  0xe6   : > { %v434_v38 = vpack.c.bf16 %v1226_v34, %v1225_v32  ;;  %v1319_v32 = vld [vmem:[%s1698_s4 + $0x20] sm:$0xff]   ;;  %v1321_v34 = vld [vmem:[%s1698_s4 + $0x18] sm:$0xff]  }
  0xe7   : > { %v356_v35 = vpop.f32.mrf.mxu0 }
  0xe8   : > { %v433_v36 = vpack.c.bf16 %v356_v35, %v353_v33  ;;  %v1320_v33 = vld [vmem:[%s1698_s4 + $0x58] sm:$0xff]   ;;  %v1322_v35 = vld [vmem:[%s1698_s4 + $0x50] sm:$0xff]  }
  0xe9   : > { %v1233_v37 = vpop.f32.mrf.mxu0 }
  0xea   : > { %604 = vmatprep.mubr.bf16.mxu0 %v433_v36  ;;  %v1323_v36 = vld [vmem:[%s1698_s4 + $0x10] sm:$0xff]  }
  0xeb   : > { %605 = vmatmul.mubr.bf16.vlgmr.msra.gmra.mxu0 %v1485_v5  ;;  %v418_v39 = vpop.f32.mrf.mxu0 }
  0xec   : > { %612 = vmatprep.mubr.bf16.mxu0 %v434_v38  ;;  %v1325_v38 = vld [vmem:[%s1698_s4 + $0x8] sm:$0xff]  }
  0xed   : > { %v1234_v40 = vpop.f32.mrf.mxu0 }
  0xee   : > { %v436_v43 = vpack.c.bf16 %v1234_v40, %v1233_v37  ;;  %v1324_v37 = vld [vmem:[%s1698_s4 + $0x48] sm:$0xff]   ;;  %v1327_v40 = vld [vmem:[%s1698_s4] sm:$0xff]  }
  0xef   : > { %v421_v41 = vpop.f32.mrf.mxu0 }
  0xf0   : > { %v435_v42 = vpack.c.bf16 %v421_v41, %v418_v39  ;;  %v1326_v39 = vld [vmem:[%s1698_s4 + $0x40] sm:$0xff]  }
  0xf3   : > { %613 = vmatmul.mubr.bf16.gmra.mxu0 %v1483_v3 }
  0xf4   : > { %620 = vmatprep.mubr.bf16.mxu0 %v435_v42 }
  0xfb   : > { %621 = vmatmul.mubr.bf16.gmra.mxu0 %v300_v14 }
  0xfc   : > { %628 = vmatprep.mubr.bf16.mxu0 %v436_v43 }
 0x103   : > { %629 = vmatmul.mubr.bf16.gmra.mxu0 %v1491_v9 }
 0x1ab   : > { %v1147_v44 = vpop.f32.mrf.mxu0 }
 0x1ad   : > { %v1148_v45 = vpop.f32.mrf.mxu0 }
 0x1ae   : > { %v1149_v53 = vadd.f32 %v1148_v45, %v1147_v44 }
 0x1af   : > { %v1150_v46 = vpop.f32.mrf.mxu0 }
 0x1b0   : > { %v607_v60 = vadd.f32 %v1149_v53, %v1075_v54 }
 0x1b1   : > { %v1151_v47 = vpop.f32.mrf.mxu0 }
 0x1b2   : > { %v1152_v50 = vadd.f32 %v1151_v47, %v1150_v46  ;;  %v637_v3 = vmax.f32 %v607_v60, 0.0 }
 0x1b3   : > { %v1153_v48 = vpop.f32.mrf.mxu0 }
 0x1b4   : > { %v610_v56 = vadd.f32 %v1152_v50, %v1075_v54 }
 0x1b5   : > { %v1154_v49 = vpop.f32.mrf.mxu0 }
 0x1b6   : > { %v1155_v51 = vadd.f32 %v1154_v49, %v1153_v48  ;;  %v638_v63 = vmax.f32 %v610_v56, 0.0 }
 0x1b7   : > { %v1156_v52 = vpop.f32.mrf.mxu0 }
 0x1b8   : > { %v615_v57 = vadd.f32 %v1155_v51, %v1075_v54  ;;  %v1566_v6 = vpack.c.bf16 %v638_v63, %v637_v3 }
 0x1b9   : > { %v1157_v55 = vpop.f32.mrf.mxu0 }
 0x1ba   : > { %v1158_v58 = vadd.f32 %v1157_v55, %v1156_v52  ;;  %v639_v0 = vmax.f32 %v615_v57, 0.0 }
 0x1bb   : > { %v1159_v59 = vpop.f32.mrf.mxu0 }
 0x1bc   : > { %v618_v61 = vadd.f32 %v1158_v58, %v1075_v54 }
 0x1bd   : > { %v1160_v62 = vpop.f32.mrf.mxu0 }
 0x1be   : > { %v640_v1 = vmax.f32 %v618_v61, 0.0  ;;  %v1161_v14 = vadd.f32 %v1160_v62, %v1159_v59 }
 0x1bf   : > { %v1162_v2 = vpop.f32.mrf.mxu0 }
 0x1c0   : > { %v1563_v4 = vpack.c.bf16 %v640_v1, %v639_v0  ;;  %v623_v20 = vadd.f32 %v1161_v14, %v1075_v54 }
 0x1c1   : > { %v1163_v5 = vpop.f32.mrf.mxu0 }
 0x1c2   : > { %1235 = vmatprep.subr.bf16.mxu1 %v1563_v4  ;;  %v1164_v9 = vadd.f32 %v1163_v5, %v1162_v2  ;;  %v641_v25 = vmax.f32 %v623_v20, 0.0 }
 0x1c3   : > { %v1165_v7 = vpop.f32.mrf.mxu0  ;;  %1236 = vmatpush3.bf16.msra.mxu1 %v1563_v4 }
 0x1c4   : > { %1237 = vmatprep.subr.bf16.mxu1 %v1566_v6  ;;  %v626_v17 = vadd.f32 %v1164_v9, %v1075_v54 }
 0x1c5   : > { %v1166_v8 = vpop.f32.mrf.mxu0 }
 0x1c6   : > { %v1167_v10 = vadd.f32 %v1166_v8, %v1165_v7  ;;  %v642_v22 = vmax.f32 %v626_v17, 0.0 }
 0x1c7   : > { %v1168_v11 = vpop.f32.mrf.mxu0  ;;  %1238 = vmatpush3.bf16.msra.mxu1 %v1566_v6 }
 0x1c8   : > { %v631_v18 = vadd.f32 %v1167_v10, %v1075_v54  ;;  %v647_v27 = vpack.c.bf16 %v642_v22, %v641_v25 }
 0x1c9   : > { %v1169_v15 = vpop.f32.mrf.mxu0 }
 0x1ca   : > { %v1170_v19 = vadd.f32 %v1169_v15, %v1168_v11  ;;  %1240 = vmatmul.mubr.msk.bf16.vlgmr.msra.gmra.mxu1 %vm312_vm0, %v1494_v12  ;;  %v643_v23 = vmax.f32 %v631_v18, 0.0  ;;  %v1313_v12 = vld [vmem:[%s1698_s4 + $0x38] sm:$0xff]  }
 0x1cb   : > { %1247 = vmatprep.mubr.msk.bf16.mxu1 %vm312_vm0, %v1497_v13  ;;  %v1314_v13 = vld [vmem:[%s1698_s4 + $0x70] sm:$0xff]  }
 0x1cc   : > { %v634_v21 = vadd.f32 %v1170_v19, %v1075_v54  ;;  %v1096_v54 = vld [vmem:[%s1699_s5] ss:$0 sm:$0xff] }
 0x1ce   : > { %v644_v24 = vmax.f32 %v634_v21, 0.0 }
 0x1d0   : > { %v648_v26 = vpack.c.bf16 %v644_v24, %v643_v23 }
 0x1d2   : > { %1243 = vmatprep.subr.bf16.mxu1 %v648_v26 }
 0x1d3   : > { %1244 = vmatpush3.bf16.msra.mxu1 %v648_v26 }
 0x1d4   : > { %1245 = vmatprep.subr.bf16.mxu1 %v647_v27 }
 0x1d7   : > { %1246 = vmatpush3.bf16.msra.mxu1 %v647_v27 }
 0x1d8   : > { %1179 = vmatprep.subr.bf16.mxu1 %v1312_v28 }
 0x1da   : > { %1248 = vmatmul.mubr.msk.bf16.vlgmr.msra.gmra.mxu1 %vm312_vm0, %v1508_v16  ;;  %v1318_v16 = vld [vmem:[%s1698_s4 + $0x60] sm:$0xff]  }
 0x1db   : > { %1180 = vmatpush3.bf16.msra.mxu1 %v1313_v12 }
 0x1dc   : > { %1181 = vmatprep.subr.bf16.mxu1 %v1314_v13 }
 0x1df   : > { %1182 = vmatpush3.bf16.msra.mxu1 %v1315_v29 }
 0x1e0   : > { %1183 = vmatprep.subr.bf16.mxu1 %v1316_v30 }
 0x1e3   : > { %1184 = vmatpush3.bf16.msra.mxu1 %v1317_v31 }
 0x1e4   : > { %1185 = vmatprep.subr.bf16.mxu1 %v1318_v16 }
 0x1e7   : > { %1186 = vmatpush3.bf16.msra.mxu1 %v1319_v32 }
 0x1e8   : > { %1187 = vmatprep.subr.bf16.mxu1 %v1320_v33 }
 0x1eb   : > { %1188 = vmatpush3.bf16.msra.mxu1 %v1321_v34 }
 0x1ec   : > { %1189 = vmatprep.subr.bf16.mxu1 %v1322_v35 }
 0x1ef   : > { %1190 = vmatpush3.bf16.msra.mxu1 %v1323_v36 }
 0x1f0   : > { %1191 = vmatprep.subr.bf16.mxu1 %v1324_v37 }
 0x1f3   : > { %1192 = vmatpush3.bf16.msra.mxu1 %v1325_v38 }
 0x1f4   : > { %1193 = vmatprep.subr.bf16.mxu1 %v1326_v39 }
 0x1f7   : > { %1194 = vmatpush3.bf16.msra.mxu1 %v1327_v40 }
 0x28a   : > { %v1241_v41 = vpop.f32.mrf.mxu1 }
 0x28c   : > { %v683_v42 = vpop.f32.mrf.mxu1 }
 0x28e   : > { %v1242_v43 = vpop.f32.mrf.mxu1 }
 0x28f   : > { %v748_v46 = vpack.c.bf16 %v1242_v43, %v1241_v41 }
 0x290   : > { %v686_v44 = vpop.f32.mrf.mxu1 }
 0x291   : > { %v747_v45 = vpack.c.bf16 %v686_v44, %v683_v42 }
 0x293   : > { %918 = vmatprep.mubr.bf16.mxu1 %v747_v45 }
 0x294   : > { %919 = vmatmul.mubr.bf16.vlgmr.msra.gmra.mxu1 %v1566_v6 }
 0x295   : > { %926 = vmatprep.mubr.bf16.mxu1 %v748_v46 }
 0x29a   : > { %v1249_v47 = vpop.f32.mrf.mxu1 }
 0x29c   : > { %v732_v48 = vpop.f32.mrf.mxu1  ;;  %927 = vmatmul.mubr.bf16.gmra.mxu1 %v1563_v4 }
 0x29e   : > { %v1250_v49 = vpop.f32.mrf.mxu1 }
 0x29f   : > { %v750_v52 = vpack.c.bf16 %v1250_v49, %v1249_v47 }
 0x2a0   : > { %v735_v50 = vpop.f32.mrf.mxu1 }
 0x2a1   : > { %v749_v51 = vpack.c.bf16 %v735_v50, %v732_v48 }
 0x2a3   : > { %934 = vmatprep.mubr.bf16.mxu1 %v749_v51 }
 0x2a4   : > { %935 = vmatmul.mubr.bf16.gmra.mxu1 %v647_v27 }
 0x2a5   : > { %942 = vmatprep.mubr.bf16.mxu1 %v750_v52 }
 0x2ac   : > { %943 = vmatmul.mubr.bf16.gmra.mxu1 %v648_v26 }
 0x354   : > { %v1195_v53 = vpop.f32.mrf.mxu1 }
 0x356   : > { %v1196_v55 = vpop.f32.mrf.mxu1 }
 0x357   : > { %v1197_v56 = vadd.f32 %v1196_v55, %v1195_v53 }
 0x358   : > { %v1198_v57 = vpop.f32.mrf.mxu1 }
 0x359   : > { %v921_v58 = vadd.f32 %v1197_v56, %v1096_v54 }
 0x35a   : > { %v1199_v59 = vpop.f32.mrf.mxu1 }
 0x35b   : > { %v951_v60 = vmax.f32 %v921_v58, 0.0  ;;  %v1200_v61 = vadd.f32 %v1199_v59, %v1198_v57 }
 0x35c   : > { %v1201_v62 = vpop.f32.mrf.mxu1 }
 0x35d   : > { %959 = vst [vmem:[%s1633_s13] sm:$0xff] %v951_v60  ;;  %v924_v63 = vadd.f32 %v1200_v61, %v1096_v54 }
 0x35e   : > { %v1202_v0 = vpop.f32.mrf.mxu1 }
 0x35f   : > { %v952_v1 = vmax.f32 %v924_v63, 0.0  ;;  %v1203_v2 = vadd.f32 %v1202_v0, %v1201_v62 }
 0x360   : > { %v1204_v3 = vpop.f32.mrf.mxu1 }
 0x361   : > { %960 = vst [vmem:[%s1633_s13 + $0x8] sm:$0xff] %v952_v1  ;;  %v929_v4 = vadd.f32 %v1203_v2, %v1096_v54 }
 0x362   : > { %v1205_v5 = vpop.f32.mrf.mxu1 }
 0x363   : > { %v953_v6 = vmax.f32 %v929_v4, 0.0  ;;  %v1206_v7 = vadd.f32 %v1205_v5, %v1204_v3 }
 0x364   : > { %v1207_v8 = vpop.f32.mrf.mxu1 }
 0x365   : > { %961 = vst [vmem:[%s1633_s13 + $0x10] sm:$0xff] %v953_v6  ;;  %v932_v9 = vadd.f32 %v1206_v7, %v1096_v54 }
 0x366   : > { %v1208_v10 = vpop.f32.mrf.mxu1 }
 0x367   : > { %v954_v11 = vmax.f32 %v932_v9, 0.0  ;;  %v1209_v14 = vadd.f32 %v1208_v10, %v1207_v8 }
 0x368   : > { %v1210_v15 = vpop.f32.mrf.mxu1 }
 0x369   : > { %962 = vst [vmem:[%s1633_s13 + $0x18] sm:$0xff] %v954_v11  ;;  %v937_v17 = vadd.f32 %v1209_v14, %v1096_v54 }
 0x36a   : > { %v1211_v18 = vpop.f32.mrf.mxu1 }
 0x36b   : > { %v955_v19 = vmax.f32 %v937_v17, 0.0  ;;  %v1212_v20 = vadd.f32 %v1211_v18, %v1210_v15 }
 0x36c   : > { %v1213_v21 = vpop.f32.mrf.mxu1 }
 0x36d   : > { %963 = vst [vmem:[%s1633_s13 + $0x20] sm:$0xff] %v955_v19  ;;  %v940_v22 = vadd.f32 %v1212_v20, %v1096_v54 }
 0x36e   : > { %v1214_v23 = vpop.f32.mrf.mxu1 }
 0x36f   : > { %v956_v24 = vmax.f32 %v940_v22, 0.0  ;;  %v1215_v25 = vadd.f32 %v1214_v23, %v1213_v21 }
 0x370   : > { %v1216_v26 = vpop.f32.mrf.mxu1 }
 0x371   : > { %964 = vst [vmem:[%s1633_s13 + $0x28] sm:$0xff] %v956_v24  ;;  %v945_v27 = vadd.f32 %v1215_v25, %v1096_v54 }
 0x372   : > { %v1217_v28 = vpop.f32.mrf.mxu1 }
 0x373   : > { %v957_v12 = vmax.f32 %v945_v27, 0.0  ;;  %v1218_v13 = vadd.f32 %v1217_v28, %v1216_v26 }
 0x375   : > { %965 = vst [vmem:[%s1633_s13 + $0x30] sm:$0xff] %v957_v12  ;;  %v948_v29 = vadd.f32 %v1218_v13, %v1096_v54 }
 0x377   : > { %v958_v30 = vmax.f32 %v948_v29, 0.0 }
 0x379   : > { %966 = vst [vmem:[%s1633_s13 + $0x38] sm:$0xff] %v958_v30 }
 0x37a   : > { %1341 = shalt.err (!%p1338_p3)
}
 0x37b   : > { %s1342_s29 = scalar_lea.hbm %s1647_s18, 1024  ;;  %s1346_s11 = scalar_lea.hbm %s1700_s6, 2048 }
 0x37c   : > { %p1343_p4 = scmp.ne.s32.totalorder %s1647_s18, %s1342_s29  ;;  %p1347_p9 = scmp.lt.s32.totalorder %s1647_s18, %s1700_s6 }
 0x37d   : > { %p1348_p10 = scmp.lt.s32.totalorder %s1346_s11, %s1342_s29 }
 0x37e   : > { %p1344_p7 = pnand %p1343_p4, %p1466_p5 }
 0x37f   : > { %p1349_p11 = por %p1348_p10, %p1347_p9 }
 0x380   : > { %p1345_p8 = pneg %p1344_p7 }
 0x382   : > { %p1350_p12 = pnand %p1349_p11, %p1345_p8 }
 0x384   : > { %1353 = shalt.err (!%p1350_p12)
}
 0x385   : > { %s1391_s14 = smov 128   ;;  %s1392_s16 = smov 8  }
 0x386   : > { %1251 = dma.vmem_to_hbm [thread:$0]  (%p1466_p5), %s1649_s15, 1024, %s1647_s18, %s1654_s19, %s1391_s14, %s1391_s14, %s1392_s16  }
 0x387 PF: > { %p1257_p13 = scmp.ge.s32.totalorder %s1388_s24, 2  ;;  %s997_s17 = sand.u32 1, %s1376_s21  }
 0x388   : > { %s998_s20 = scalar_lea.sflag [#allocation3], %s997_s17 }
 0x389   : > { %p1254_p0 = pnand %p1257_p13, %p1470_p6 }
 0x38b   : > { %p1255_p1 = pneg %p1254_p0 }
 0x38d   : > { %1371 = dma.done.wait (%p1255_p1), %s998_s20, 1024  }
 0x38e   : > { %1373 = vsyncadd (%p1255_p1), %s998_s20, 4294966272  ;;  %p16_p2 = scmp.ge.s32.totalorder %s1453_s27, 4   ;;  %s1703_s21 = smov %s1380_s22 }
 0x38f   : > { %s1704_s22 = smov %s1384_s23  ;;  %s1705_s23 = smov %s1464_s30 }
 0x390   : > { %s1706_s24 = smov %s1453_s27  ;;  %18 = sbr.rel (!%p16_p2) target bundleno = 3 (0x3), region = 82 }
 0x395   :  { %1003 = vsyncpa [#allocation3], 1 }
 0x396   :  { %1005 = vsyncpa [#allocation3 + $0x1], 1 }

</bundles_post_ra>
